<compile_context>
chip_gen: v6e
topology: v6e:2x2x1
jax: 0.10.0
libtpu: 0.0.40
codegen_flags: <defaults>
</compile_context>

<pallas_src>
from functools import partial

import jax
import jax.numpy as jnp
from jax.experimental import pallas as pl
from jax.experimental.pallas import tpu as pltpu

EPS = 1e-5


# ---------------------------------------------------------------------------
# Fused kernel: LayerNorm -> Conv1d(k=3, pad=1) -> ReLU -> Linear(D -> tile_v)
# for Tb batch elements (full sequence) and one vocab tile.
# Output layout is the final (batch, vocab, seq).
# ---------------------------------------------------------------------------
def _fused_kernel(x_ref, g_ref, b_ref, w0_ref, w1_ref, w2_ref, cb_ref,
                  fw_ref, fb_ref, o_ref, h_ref):
    # x_ref  : (Tb, S, D)  bf16  embeddings for Tb batch elements
    # g/b    : (1, D)      f32   LayerNorm gamma / beta
    # w0/1/2 : (D, D)      bf16  conv taps, transposed to (C_in, C_out)
    # cb     : (1, D)      f32   conv bias
    # fw     : (Tv, D)     bf16  FC weight tile in native (vocab, D) layout
    # fb     : (Tv, 1)     f32   FC bias tile
    # o_ref  : (Tb, Tv, S) f32   logits tile (final layout, no host transpose)
    # h_ref  : (Tb, S, D)  bf16  scratch: conv+ReLU hidden, reused across V tiles
    v_idx = pl.program_id(1)
    Tb, S, D = x_ref.shape

    # LayerNorm + conv + ReLU once per batch block.  Valid only because the
    # vocab axis is the innermost, sequential ("arbitrary") grid axis, so the
    # scratch written at v == 0 is live for every subsequent vocab tile.
    @pl.when(v_idx == 0)
    def _():
        row = jax.lax.broadcasted_iota(jnp.int32, (S, D), 0)
        for b in range(Tb):            # static, small: bounds f32 temporaries
            x = x_ref[b].astype(jnp.float32)                       # (S, D)
            mean = jnp.mean(x, axis=-1, keepdims=True)
            xc = x - mean
            var = jnp.mean(xc * xc, axis=-1, keepdims=True)
            y = xc * jax.lax.rsqrt(var + EPS) * g_ref[...] + b_ref[...]
            # +-1 sequence shifts via XLU rolls + edge masks (zero padding).
            y_prev = jnp.where(row == 0, 0.0, pltpu.roll(y, 1, axis=0))
            y_next = jnp.where(row == S - 1, 0.0,
                               pltpu.roll(y, S - 1, axis=0))
            h = jnp.dot(y_prev.astype(jnp.bfloat16), w0_ref[...],
                        preferred_element_type=jnp.float32)
            h += jnp.dot(y.astype(jnp.bfloat16), w1_ref[...],
                         preferred_element_type=jnp.float32)
            h += jnp.dot(y_next.astype(jnp.bfloat16), w2_ref[...],
                         preferred_element_type=jnp.float32)
            h = jnp.maximum(h + cb_ref[...], 0.0)
            h_ref[b] = h.astype(h_ref.dtype)

    # FC for this vocab tile: (Tv, D) x (S, D)^T -> (Tv, S), written directly
    # in (batch, vocab, seq) order so no wrapper-side slice+transpose of the
    # largest tensor is needed.
    for b in range(Tb):
        logits = jax.lax.dot_general(
            fw_ref[...], h_ref[b],
            dimension_numbers=(((1,), (1,)), ((), ())),
            preferred_element_type=jnp.float32)                     # (Tv, S)
        o_ref[b] = (logits + fb_ref[...]).astype(o_ref.dtype)


# ---------------------------------------------------------------------------
# Wrapper / tiling decisions.
# ---------------------------------------------------------------------------
def _round_up(x, m):
    return (x + m - 1) // m * m


def _largest_divisor_leq(n, cap):
    for d in range(min(n, cap), 0, -1):
        if n % d == 0:
            return d
    return 1


def fused_cnnae(x, prep, *, tile_v):
    B, S, D = x.shape
    Vp = prep["fc_w_pad"].shape[0]
    n_v = Vp // tile_v

    # Group Tb batch elements per block: the (Vp, D) FC weight is read from
    # HBM once per Tb elements instead of once per element.  Cap Tb so the
    # x / h / out blocks stay inside a conservative VMEM budget.
    per_elem = S * D * (2 * 2 + 2) + 2 * tile_v * S * 4
    tb_cap = max(1, min(8, (24 * 1024 * 1024) // max(per_elem, 1)))
    Tb = _largest_divisor_leq(B, tb_cap)
    n_bg = B // Tb

    # Explicit VMEM budget (v5e default scoped limit is only 16 MiB of 128).
    vmem_bytes = (
        2 * Tb * S * D * 2            # x blocks (bf16, double-buffered)
        + Tb * S * D * 2              # h scratch (bf16)
        + 2 * 3 * D * D * 2           # conv taps (bf16)
        + 2 * tile_v * D * 2          # fc weight tile (bf16, double-buffered)
        + 2 * Tb * tile_v * S * 4     # out tile (f32, double-buffered)
        + 6 * S * D * 4               # in-kernel f32 LN/conv temporaries
        + 8 * D * 4 + 4 * tile_v * 4)
    vmem_limit = min(max(32 * 1024 * 1024, int(vmem_bytes * 1.5)),
                     128 * 1024 * 1024)

    cost = pl.CostEstimate(
        flops=2 * B * S * D * (3 * D + Vp) + 10 * B * S * D,
        transcendentals=B * S,
        bytes_accessed=(B * S * D * 2 + 3 * D * D * 2 + Vp * D * 2
                        + Vp * 4 + B * Vp * S * 4))

    return pl.pallas_call(
        _fused_kernel,
        out_shape=jax.ShapeDtypeStruct((B, Vp, S), jnp.float32),
        grid_spec=pltpu.PrefetchScalarGridSpec(
            num_scalar_prefetch=0,
            grid=(n_bg, n_v),
            in_specs=[
                pl.BlockSpec((Tb, S, D), lambda g, v: (g, 0, 0)),
                pl.BlockSpec((1, D), lambda g, v: (0, 0)),
                pl.BlockSpec((1, D), lambda g, v: (0, 0)),
                pl.BlockSpec((D, D), lambda g, v: (0, 0)),
                pl.BlockSpec((D, D), lambda g, v: (0, 0)),
                pl.BlockSpec((D, D), lambda g, v: (0, 0)),
                pl.BlockSpec((1, D), lambda g, v: (0, 0)),
                pl.BlockSpec((tile_v, D), lambda g, v: (v, 0)),
                pl.BlockSpec((tile_v, 1), lambda g, v: (v, 0)),
            ],
            out_specs=pl.BlockSpec((Tb, tile_v, S), lambda g, v: (g, v, 0)),
            scratch_shapes=[pltpu.VMEM((Tb, S, D), jnp.bfloat16)],
        ),
        compiler_params=pltpu.CompilerParams(
            # NOTE: the vocab axis must stay innermost and "arbitrary" -- the
            # conv hidden scratch written at v == 0 is reused across v.
            dimension_semantics=("parallel", "arbitrary"),
            vmem_limit_bytes=vmem_limit),
        cost_estimate=cost,
    )(x, prep["ln_gamma"], prep["ln_beta"],
      prep["conv_w0"], prep["conv_w1"], prep["conv_w2"], prep["conv_b"],
      prep["fc_w_pad"], prep["fc_b_pad"])


def prepare_params(params, *, tile_v_target=512):
    """One-time weight repacking, hoisted out of the per-step forward."""
    D = params["embedding"].shape[1]
    V = params["fc_w"].shape[0]
    tile_v = tile_v_target if V >= tile_v_target else _round_up(V, 8)
    Vp = _round_up(V, tile_v)
    cw = params["conv_w"]                                      # (C_out, C_in, 3)
    fw_pad = jnp.zeros((Vp, D), jnp.bfloat16).at[:V].set(
        params["fc_w"].astype(jnp.bfloat16))                   # native (V, D)
    fb_pad = jnp.zeros((Vp, 1), jnp.float32).at[:V, 0].set(
        params["fc_b"].astype(jnp.float32))
    prep = {
        "embedding_bf16": params["embedding"].astype(jnp.bfloat16),
        "ln_gamma": params["ln_gamma"].reshape(1, D).astype(jnp.float32),
        "ln_beta": params["ln_beta"].reshape(1, D).astype(jnp.float32),
        "conv_w0": cw[:, :, 0].T.astype(jnp.bfloat16),
        "conv_w1": cw[:, :, 1].T.astype(jnp.bfloat16),
        "conv_w2": cw[:, :, 2].T.astype(jnp.bfloat16),
        "conv_b": params["conv_b"].reshape(1, D).astype(jnp.float32),
        "fc_w_pad": fw_pad,
        "fc_b_pad": fb_pad,
    }
    cfg = {"vocab_size": V, "tile_v": tile_v}
    return prep, cfg


def cnnae_forward(tokens, prep, *, vocab_size, tile_v):
    """tokens: (B, S) int32 token ids -> (B, V, S) float32 logits."""
    # Embedding gather in bf16; x[b, s, :] == PyTorch embed[s, b, :].
    # TODO(synk): could be fused into the kernel via scalar-prefetch row
    # gather; kept in XLA since it is a single pass over (B*S, D).
    x = jnp.take(prep["embedding_bf16"], tokens, axis=0)        # (B, S, D)
    out = fused_cnnae(x, prep, tile_v=tile_v)                   # (B, Vp, S)
    if out.shape[1] != vocab_size:
        out = out[:, :vocab_size, :]      # drop vocab padding (no transpose)
    return out


# ---------------------------------------------------------------------------
# Pure-JAX f32 reference (for a loose numerical check).
# ---------------------------------------------------------------------------
def cnnae_reference(tokens, params):
    emb = params["embedding"][tokens]                        # (B, S, D) f32
    mean = emb.mean(-1, keepdims=True)
    var = ((emb - mean) ** 2).mean(-1, keepdims=True)
    y = (emb - mean) / jnp.sqrt(var + EPS) * params["ln_gamma"] + params["ln_beta"]
    y_prev = jnp.pad(y, ((0, 0), (1, 0), (0, 0)))[:, :-1]
    y_next = jnp.pad(y, ((0, 0), (0, 1), (0, 0)))[:, 1:]
    cw = params["conv_w"]
    h = (y_prev @ cw[:, :, 0].T + y @ cw[:, :, 1].T + y_next @ cw[:, :, 2].T
         + params["conv_b"])
    h = jnp.maximum(h, 0.0)
    logits = h @ params["fc_w"].T + params["fc_b"]           # (B, S, V)
    return logits.transpose(0, 2, 1)                         # (B, V, S)


def init_params(key, model_size, vocab_size):
    k_emb, k_cw, k_cb, k_fw, k_fb = jax.random.split(key, 5)
    scale = 0.02
    return {
        "embedding": scale * jax.random.normal(k_emb, (vocab_size, model_size), jnp.float32),
        "ln_gamma": jnp.ones((model_size,), jnp.float32),
        "ln_beta": jnp.zeros((model_size,), jnp.float32),
        "conv_w": scale * jax.random.normal(k_cw, (model_size, model_size, 3), jnp.float32),
        "conv_b": scale * jax.random.normal(k_cb, (model_size,), jnp.float32),
        "fc_w": scale * jax.random.normal(k_fw, (vocab_size, model_size), jnp.float32),
        "fc_b": scale * jax.random.normal(k_fb, (vocab_size,), jnp.float32),
    }


if __name__ == "__main__":
    MODEL_SIZE = 128   # small, lane-aligned stand-in for the default 512
    VOCAB_SIZE = 16
    BATCH, SEQ = 2, 8  # SEQ should be a multiple of 8 (sublane alignment)

    key = jax.random.PRNGKey(0)
    k_par, k_tok = jax.random.split(key)
    params = init_params(k_par, MODEL_SIZE, VOCAB_SIZE)
    tokens = jax.random.randint(k_tok, (BATCH, SEQ), 0, VOCAB_SIZE, dtype=jnp.int32)

    prep, cfg = prepare_params(params)            # one-time weight repacking
    fwd = jax.jit(partial(cnnae_forward, **cfg))

    out = jax.block_until_ready(fwd(tokens, prep))
    assert out.shape == (BATCH, VOCAB_SIZE, SEQ), out.shape
    assert out.dtype == jnp.float32

    # Loose check vs. pure-JAX f32 reference (kernel uses bf16 weights/acts).
    ref = jax.jit(cnnae_reference)(tokens, params)
    max_err = float(jnp.max(jnp.abs(out - ref)))
    assert max_err < 5e-2, f"max abs error {max_err}"

    print("KERNEL_OK")
</pallas_src>

<mosaic_0001>
module attributes {stable_mosaic.version = 11 : i64} {
  func.func @_fused_kernel(%arg0: i32, %arg1: i32, %arg2: memref<2x8x128xbf16, #tpu.memory_space<vmem>>, %arg3: memref<1x128xf32, #tpu.memory_space<vmem>>, %arg4: memref<1x128xf32, #tpu.memory_space<vmem>>, %arg5: memref<128x128xbf16, #tpu.memory_space<vmem>>, %arg6: memref<128x128xbf16, #tpu.memory_space<vmem>>, %arg7: memref<128x128xbf16, #tpu.memory_space<vmem>>, %arg8: memref<1x128xf32, #tpu.memory_space<vmem>>, %arg9: memref<16x128xbf16, #tpu.memory_space<vmem>>, %arg10: memref<16x1xf32, #tpu.memory_space<vmem>>, %arg11: memref<2x16x8xf32, #tpu.memory_space<vmem>>, %arg12: memref<2x8x128xbf16, #tpu.memory_space<vmem>>) attributes {dimension_semantics = [#tpu.dimension_semantics<parallel>, #tpu.dimension_semantics<arbitrary>], iteration_bounds = array<i64: 1, 1>, scalar_prefetch = 0 : i64, scratch_operands = 1 : i64, tpu.core_type = #tpu.core_type<tc>, window_params = [{transform_indices = @transform_0, window_bounds = array<i64: 2, 8, 128>}, {pipeline_mode = #tpu.pipeline_mode<synchronous>, transform_indices = @transform_1, window_bounds = array<i64: 1, 128>}, {pipeline_mode = #tpu.pipeline_mode<synchronous>, transform_indices = @transform_2, window_bounds = array<i64: 1, 128>}, {pipeline_mode = #tpu.pipeline_mode<synchronous>, transform_indices = @transform_3, window_bounds = array<i64: 128, 128>}, {pipeline_mode = #tpu.pipeline_mode<synchronous>, transform_indices = @transform_4, window_bounds = array<i64: 128, 128>}, {pipeline_mode = #tpu.pipeline_mode<synchronous>, transform_indices = @transform_5, window_bounds = array<i64: 128, 128>}, {pipeline_mode = #tpu.pipeline_mode<synchronous>, transform_indices = @transform_6, window_bounds = array<i64: 1, 128>}, {transform_indices = @transform_7, window_bounds = array<i64: 16, 128>}, {transform_indices = @transform_8, window_bounds = array<i64: 16, 1>}, {transform_indices = @transform_9, window_bounds = array<i64: 2, 16, 8>}]} {
    %c0_i32 = arith.constant 0 : i32
    %0 = arith.cmpi eq, %arg1, %c0_i32 : i32
    %1 = arith.extui %0 : i1 to i32
    %c0_i32_0 = arith.constant 0 : i32
    %2 = arith.cmpi ne, %1, %c0_i32_0 : i32
    scf.if %2 {
      %23 = tpu.iota {dimensions = array<i32: 0>} : vector<8x128xi32>
      %c0_20 = arith.constant 0 : index
      %c0_21 = arith.constant 0 : index
      %c0_22 = arith.constant 0 : index
      %24 = vector.load %arg2[%c0_20, %c0_21, %c0_22] : memref<2x8x128xbf16, #tpu.memory_space<vmem>>, vector<1x8x128xbf16>
      %25 = vector.shape_cast %24 : vector<1x8x128xbf16> to vector<8x128xbf16>
      %26 = arith.extf %25 : vector<8x128xbf16> to vector<8x128xf32>
      %cst_23 = arith.constant dense<0.000000e+00> : vector<8xf32>
      %27 = vector.multi_reduction <add>, %26, %cst_23 [1] : vector<8x128xf32> to vector<8xf32>
      %28 = vector.shape_cast %27 : vector<8xf32> to vector<8x1xf32>
      %cst_24 = arith.constant 1.280000e+02 : f32
      %29 = vector.broadcast %cst_24 : f32 to vector<8x1xf32>
      %30 = arith.divf %28, %29 : vector<8x1xf32>
      %31 = vector.broadcast %30 : vector<8x1xf32> to vector<8x128xf32>
      %32 = arith.subf %26, %31 : vector<8x128xf32>
      %33 = arith.mulf %32, %32 : vector<8x128xf32>
      %cst_25 = arith.constant dense<0.000000e+00> : vector<8xf32>
      %34 = vector.multi_reduction <add>, %33, %cst_25 [1] : vector<8x128xf32> to vector<8xf32>
      %35 = vector.shape_cast %34 : vector<8xf32> to vector<8x1xf32>
      %cst_26 = arith.constant 1.280000e+02 : f32
      %36 = vector.broadcast %cst_26 : f32 to vector<8x1xf32>
      %37 = arith.divf %35, %36 : vector<8x1xf32>
      %cst_27 = arith.constant 9.99999974E-6 : f32
      %38 = vector.broadcast %cst_27 : f32 to vector<8x1xf32>
      %39 = arith.addf %37, %38 : vector<8x1xf32>
      %40 = math.rsqrt %39 : vector<8x1xf32>
      %41 = vector.broadcast %40 : vector<8x1xf32> to vector<8x128xf32>
      %42 = arith.mulf %32, %41 : vector<8x128xf32>
      %c0_28 = arith.constant 0 : index
      %c0_29 = arith.constant 0 : index
      %43 = vector.load %arg3[%c0_28, %c0_29] : memref<1x128xf32, #tpu.memory_space<vmem>>, vector<1x128xf32>
      %44 = vector.broadcast %43 : vector<1x128xf32> to vector<8x128xf32>
      %45 = arith.mulf %42, %44 : vector<8x128xf32>
      %c0_30 = arith.constant 0 : index
      %c0_31 = arith.constant 0 : index
      %46 = vector.load %arg4[%c0_30, %c0_31] : memref<1x128xf32, #tpu.memory_space<vmem>>, vector<1x128xf32>
      %47 = vector.broadcast %46 : vector<1x128xf32> to vector<8x128xf32>
      %48 = arith.addf %45, %47 : vector<8x128xf32>
      %c0_i32_32 = arith.constant 0 : i32
      %49 = vector.broadcast %c0_i32_32 : i32 to vector<8x128xi32>
      %50 = arith.cmpi eq, %23, %49 : vector<8x128xi32>
      %c1_i32 = arith.constant 1 : i32
      %51 = tpu.dynamic_rotate %48 by %c1_i32 dim 0 : vector<8x128xf32>, i32 -> vector<8x128xf32>
      %cst_33 = arith.constant 0.000000e+00 : f32
      %52 = vector.broadcast %cst_33 : f32 to vector<8x128xf32>
      %53 = arith.select %50, %52, %51 : vector<8x128xi1>, vector<8x128xf32>
      %c7_i32 = arith.constant 7 : i32
      %54 = vector.broadcast %c7_i32 : i32 to vector<8x128xi32>
      %55 = arith.cmpi eq, %23, %54 : vector<8x128xi32>
      %c7_i32_34 = arith.constant 7 : i32
      %56 = tpu.dynamic_rotate %48 by %c7_i32_34 dim 0 : vector<8x128xf32>, i32 -> vector<8x128xf32>
      %cst_35 = arith.constant 0.000000e+00 : f32
      %57 = vector.broadcast %cst_35 : f32 to vector<8x128xf32>
      %58 = arith.select %55, %57, %56 : vector<8x128xi1>, vector<8x128xf32>
      %59 = arith.truncf %53 : vector<8x128xf32> to vector<8x128xbf16>
      %c0_36 = arith.constant 0 : index
      %c0_37 = arith.constant 0 : index
      %60 = vector.load %arg5[%c0_36, %c0_37] : memref<128x128xbf16, #tpu.memory_space<vmem>>, vector<128x128xbf16>
      %cst_38 = arith.constant dense<0.000000e+00> : vector<8x128xf32>
      %61 = tpu.matmul %59, %60, %cst_38 {dimension_numbers = #tpu.dot_dimension_numbers<[1], [0], [0], [1], [0, 0, 1, 1], [], []>} : vector<8x128xbf16>, vector<128x128xbf16>, vector<8x128xf32> -> vector<8x128xf32>
      %62 = arith.truncf %48 : vector<8x128xf32> to vector<8x128xbf16>
      %c0_39 = arith.constant 0 : index
      %c0_40 = arith.constant 0 : index
      %63 = vector.load %arg6[%c0_39, %c0_40] : memref<128x128xbf16, #tpu.memory_space<vmem>>, vector<128x128xbf16>
      %cst_41 = arith.constant dense<0.000000e+00> : vector<8x128xf32>
      %64 = tpu.matmul %62, %63, %cst_41 {dimension_numbers = #tpu.dot_dimension_numbers<[1], [0], [0], [1], [0, 0, 1, 1], [], []>} : vector<8x128xbf16>, vector<128x128xbf16>, vector<8x128xf32> -> vector<8x128xf32>
      %65 = arith.addf %61, %64 : vector<8x128xf32>
      %66 = arith.truncf %58 : vector<8x128xf32> to vector<8x128xbf16>
      %c0_42 = arith.constant 0 : index
      %c0_43 = arith.constant 0 : index
      %67 = vector.load %arg7[%c0_42, %c0_43] : memref<128x128xbf16, #tpu.memory_space<vmem>>, vector<128x128xbf16>
      %cst_44 = arith.constant dense<0.000000e+00> : vector<8x128xf32>
      %68 = tpu.matmul %66, %67, %cst_44 {dimension_numbers = #tpu.dot_dimension_numbers<[1], [0], [0], [1], [0, 0, 1, 1], [], []>} : vector<8x128xbf16>, vector<128x128xbf16>, vector<8x128xf32> -> vector<8x128xf32>
      %69 = arith.addf %65, %68 : vector<8x128xf32>
      %c0_45 = arith.constant 0 : index
      %c0_46 = arith.constant 0 : index
      %70 = vector.load %arg8[%c0_45, %c0_46] : memref<1x128xf32, #tpu.memory_space<vmem>>, vector<1x128xf32>
      %71 = vector.broadcast %70 : vector<1x128xf32> to vector<8x128xf32>
      %72 = arith.addf %69, %71 : vector<8x128xf32>
      %cst_47 = arith.constant 0.000000e+00 : f32
      %73 = vector.broadcast %cst_47 : f32 to vector<8x128xf32>
      %74 = arith.maximumf %72, %73 : vector<8x128xf32>
      %75 = arith.truncf %74 : vector<8x128xf32> to vector<8x128xbf16>
      %c0_48 = arith.constant 0 : index
      %c0_49 = arith.constant 0 : index
      %c0_50 = arith.constant 0 : index
      %76 = vector.load %arg12[%c0_48, %c0_49, %c0_50] : memref<2x8x128xbf16, #tpu.memory_space<vmem>>, vector<1x8x128xbf16>
      %77 = vector.shape_cast %76 : vector<1x8x128xbf16> to vector<8x128xbf16>
      %78 = vector.shape_cast %75 : vector<8x128xbf16> to vector<1x8x128xbf16>
      tpu.vector_store %arg12[%c0_48, %c0_49, %c0_50], %78 {strides = array<i32>} : memref<2x8x128xbf16, #tpu.memory_space<vmem>>, vector<1x8x128xbf16>,
      %c1_51 = arith.constant 1 : index
      %c0_52 = arith.constant 0 : index
      %c0_53 = arith.constant 0 : index
      %79 = vector.load %arg2[%c1_51, %c0_52, %c0_53] : memref<2x8x128xbf16, #tpu.memory_space<vmem>>, vector<1x8x128xbf16>
      %80 = vector.shape_cast %79 : vector<1x8x128xbf16> to vector<8x128xbf16>
      %81 = arith.extf %80 : vector<8x128xbf16> to vector<8x128xf32>
      %cst_54 = arith.constant dense<0.000000e+00> : vector<8xf32>
      %82 = vector.multi_reduction <add>, %81, %cst_54 [1] : vector<8x128xf32> to vector<8xf32>
      %83 = vector.shape_cast %82 : vector<8xf32> to vector<8x1xf32>
      %cst_55 = arith.constant 1.280000e+02 : f32
      %84 = vector.broadcast %cst_55 : f32 to vector<8x1xf32>
      %85 = arith.divf %83, %84 : vector<8x1xf32>
      %86 = vector.broadcast %85 : vector<8x1xf32> to vector<8x128xf32>
      %87 = arith.subf %81, %86 : vector<8x128xf32>
      %88 = arith.mulf %87, %87 : vector<8x128xf32>
      %cst_56 = arith.constant dense<0.000000e+00> : vector<8xf32>
      %89 = vector.multi_reduction <add>, %88, %cst_56 [1] : vector<8x128xf32> to vector<8xf32>
      %90 = vector.shape_cast %89 : vector<8xf32> to vector<8x1xf32>
      %cst_57 = arith.constant 1.280000e+02 : f32
      %91 = vector.broadcast %cst_57 : f32 to vector<8x1xf32>
      %92 = arith.divf %90, %91 : vector<8x1xf32>
      %cst_58 = arith.constant 9.99999974E-6 : f32
      %93 = vector.broadcast %cst_58 : f32 to vector<8x1xf32>
      %94 = arith.addf %92, %93 : vector<8x1xf32>
      %95 = math.rsqrt %94 : vector<8x1xf32>
      %96 = vector.broadcast %95 : vector<8x1xf32> to vector<8x128xf32>
      %97 = arith.mulf %87, %96 : vector<8x128xf32>
      %c0_59 = arith.constant 0 : index
      %c0_60 = arith.constant 0 : index
      %98 = vector.load %arg3[%c0_59, %c0_60] : memref<1x128xf32, #tpu.memory_space<vmem>>, vector<1x128xf32>
      %99 = vector.broadcast %98 : vector<1x128xf32> to vector<8x128xf32>
      %100 = arith.mulf %97, %99 : vector<8x128xf32>
      %c0_61 = arith.constant 0 : index
      %c0_62 = arith.constant 0 : index
      %101 = vector.load %arg4[%c0_61, %c0_62] : memref<1x128xf32, #tpu.memory_space<vmem>>, vector<1x128xf32>
      %102 = vector.broadcast %101 : vector<1x128xf32> to vector<8x128xf32>
      %103 = arith.addf %100, %102 : vector<8x128xf32>
      %c0_i32_63 = arith.constant 0 : i32
      %104 = vector.broadcast %c0_i32_63 : i32 to vector<8x128xi32>
      %105 = arith.cmpi eq, %23, %104 : vector<8x128xi32>
      %c1_i32_64 = arith.constant 1 : i32
      %106 = tpu.dynamic_rotate %103 by %c1_i32_64 dim 0 : vector<8x128xf32>, i32 -> vector<8x128xf32>
      %cst_65 = arith.constant 0.000000e+00 : f32
      %107 = vector.broadcast %cst_65 : f32 to vector<8x128xf32>
      %108 = arith.select %105, %107, %106 : vector<8x128xi1>, vector<8x128xf32>
      %c7_i32_66 = arith.constant 7 : i32
      %109 = vector.broadcast %c7_i32_66 : i32 to vector<8x128xi32>
      %110 = arith.cmpi eq, %23, %109 : vector<8x128xi32>
      %c7_i32_67 = arith.constant 7 : i32
      %111 = tpu.dynamic_rotate %103 by %c7_i32_67 dim 0 : vector<8x128xf32>, i32 -> vector<8x128xf32>
      %cst_68 = arith.constant 0.000000e+00 : f32
      %112 = vector.broadcast %cst_68 : f32 to vector<8x128xf32>
      %113 = arith.select %110, %112, %111 : vector<8x128xi1>, vector<8x128xf32>
      %114 = arith.truncf %108 : vector<8x128xf32> to vector<8x128xbf16>
      %c0_69 = arith.constant 0 : index
      %c0_70 = arith.constant 0 : index
      %115 = vector.load %arg5[%c0_69, %c0_70] : memref<128x128xbf16, #tpu.memory_space<vmem>>, vector<128x128xbf16>
      %cst_71 = arith.constant dense<0.000000e+00> : vector<8x128xf32>
      %116 = tpu.matmul %114, %115, %cst_71 {dimension_numbers = #tpu.dot_dimension_numbers<[1], [0], [0], [1], [0, 0, 1, 1], [], []>} : vector<8x128xbf16>, vector<128x128xbf16>, vector<8x128xf32> -> vector<8x128xf32>
      %117 = arith.truncf %103 : vector<8x128xf32> to vector<8x128xbf16>
      %c0_72 = arith.constant 0 : index
      %c0_73 = arith.constant 0 : index
      %118 = vector.load %arg6[%c0_72, %c0_73] : memref<128x128xbf16, #tpu.memory_space<vmem>>, vector<128x128xbf16>
      %cst_74 = arith.constant dense<0.000000e+00> : vector<8x128xf32>
      %119 = tpu.matmul %117, %118, %cst_74 {dimension_numbers = #tpu.dot_dimension_numbers<[1], [0], [0], [1], [0, 0, 1, 1], [], []>} : vector<8x128xbf16>, vector<128x128xbf16>, vector<8x128xf32> -> vector<8x128xf32>
      %120 = arith.addf %116, %119 : vector<8x128xf32>
      %121 = arith.truncf %113 : vector<8x128xf32> to vector<8x128xbf16>
      %c0_75 = arith.constant 0 : index
      %c0_76 = arith.constant 0 : index
      %122 = vector.load %arg7[%c0_75, %c0_76] : memref<128x128xbf16, #tpu.memory_space<vmem>>, vector<128x128xbf16>
      %cst_77 = arith.constant dense<0.000000e+00> : vector<8x128xf32>
      %123 = tpu.matmul %121, %122, %cst_77 {dimension_numbers = #tpu.dot_dimension_numbers<[1], [0], [0], [1], [0, 0, 1, 1], [], []>} : vector<8x128xbf16>, vector<128x128xbf16>, vector<8x128xf32> -> vector<8x128xf32>
      %124 = arith.addf %120, %123 : vector<8x128xf32>
      %c0_78 = arith.constant 0 : index
      %c0_79 = arith.constant 0 : index
      %125 = vector.load %arg8[%c0_78, %c0_79] : memref<1x128xf32, #tpu.memory_space<vmem>>, vector<1x128xf32>
      %126 = vector.broadcast %125 : vector<1x128xf32> to vector<8x128xf32>
      %127 = arith.addf %124, %126 : vector<8x128xf32>
      %cst_80 = arith.constant 0.000000e+00 : f32
      %128 = vector.broadcast %cst_80 : f32 to vector<8x128xf32>
      %129 = arith.maximumf %127, %128 : vector<8x128xf32>
      %130 = arith.truncf %129 : vector<8x128xf32> to vector<8x128xbf16>
      %c1_81 = arith.constant 1 : index
      %c0_82 = arith.constant 0 : index
      %c0_83 = arith.constant 0 : index
      %131 = vector.load %arg12[%c1_81, %c0_82, %c0_83] : memref<2x8x128xbf16, #tpu.memory_space<vmem>>, vector<1x8x128xbf16>
      %132 = vector.shape_cast %131 : vector<1x8x128xbf16> to vector<8x128xbf16>
      %133 = vector.shape_cast %130 : vector<8x128xbf16> to vector<1x8x128xbf16>
      tpu.vector_store %arg12[%c1_81, %c0_82, %c0_83], %133 {strides = array<i32>} : memref<2x8x128xbf16, #tpu.memory_space<vmem>>, vector<1x8x128xbf16>,
    } else {
    }
    %c0 = arith.constant 0 : index
    %c0_1 = arith.constant 0 : index
    %3 = vector.load %arg9[%c0, %c0_1] : memref<16x128xbf16, #tpu.memory_space<vmem>>, vector<16x128xbf16>
    %c0_2 = arith.constant 0 : index
    %c0_3 = arith.constant 0 : index
    %c0_4 = arith.constant 0 : index
    %4 = vector.load %arg12[%c0_2, %c0_3, %c0_4] : memref<2x8x128xbf16, #tpu.memory_space<vmem>>, vector<1x8x128xbf16>
    %5 = vector.shape_cast %4 : vector<1x8x128xbf16> to vector<8x128xbf16>
    %cst = arith.constant dense<0.000000e+00> : vector<16x8xf32>
    %6 = tpu.matmul %3, %5, %cst {dimension_numbers = #tpu.dot_dimension_numbers<[1], [1], [0], [0], [0, 0, 1, 0], [], []>} : vector<16x128xbf16>, vector<8x128xbf16>, vector<16x8xf32> -> vector<16x8xf32>
    %c0_5 = arith.constant 0 : index
    %c0_6 = arith.constant 0 : index
    %7 = vector.load %arg10[%c0_5, %c0_6] : memref<16x1xf32, #tpu.memory_space<vmem>>, vector<16x1xf32>
    %8 = vector.broadcast %7 : vector<16x1xf32> to vector<16x8xf32>
    %9 = arith.addf %6, %8 : vector<16x8xf32>
    %c0_7 = arith.constant 0 : index
    %c0_8 = arith.constant 0 : index
    %c0_9 = arith.constant 0 : index
    %10 = vector.load %arg11[%c0_7, %c0_8, %c0_9] : memref<2x16x8xf32, #tpu.memory_space<vmem>>, vector<1x16x8xf32>
    %11 = vector.shape_cast %10 : vector<1x16x8xf32> to vector<16x8xf32>
    %12 = vector.shape_cast %9 : vector<16x8xf32> to vector<1x16x8xf32>
    tpu.vector_store %arg11[%c0_7, %c0_8, %c0_9], %12 {strides = array<i32>} : memref<2x16x8xf32, #tpu.memory_space<vmem>>, vector<1x16x8xf32>,
    %c0_10 = arith.constant 0 : index
    %c0_11 = arith.constant 0 : index
    %13 = vector.load %arg9[%c0_10, %c0_11] : memref<16x128xbf16, #tpu.memory_space<vmem>>, vector<16x128xbf16>
    %c1 = arith.constant 1 : index
    %c0_12 = arith.constant 0 : index
    %c0_13 = arith.constant 0 : index
    %14 = vector.load %arg12[%c1, %c0_12, %c0_13] : memref<2x8x128xbf16, #tpu.memory_space<vmem>>, vector<1x8x128xbf16>
    %15 = vector.shape_cast %14 : vector<1x8x128xbf16> to vector<8x128xbf16>
    %cst_14 = arith.constant dense<0.000000e+00> : vector<16x8xf32>
    %16 = tpu.matmul %13, %15, %cst_14 {dimension_numbers = #tpu.dot_dimension_numbers<[1], [1], [0], [0], [0, 0, 1, 0], [], []>} : vector<16x128xbf16>, vector<8x128xbf16>, vector<16x8xf32> -> vector<16x8xf32>
    %c0_15 = arith.constant 0 : index
    %c0_16 = arith.constant 0 : index
    %17 = vector.load %arg10[%c0_15, %c0_16] : memref<16x1xf32, #tpu.memory_space<vmem>>, vector<16x1xf32>
    %18 = vector.broadcast %17 : vector<16x1xf32> to vector<16x8xf32>
    %19 = arith.addf %16, %18 : vector<16x8xf32>
    %c1_17 = arith.constant 1 : index
    %c0_18 = arith.constant 0 : index
    %c0_19 = arith.constant 0 : index
    %20 = vector.load %arg11[%c1_17, %c0_18, %c0_19] : memref<2x16x8xf32, #tpu.memory_space<vmem>>, vector<1x16x8xf32>
    %21 = vector.shape_cast %20 : vector<1x16x8xf32> to vector<16x8xf32>
    %22 = vector.shape_cast %19 : vector<16x8xf32> to vector<1x16x8xf32>
    tpu.vector_store %arg11[%c1_17, %c0_18, %c0_19], %22 {strides = array<i32>} : memref<2x16x8xf32, #tpu.memory_space<vmem>>, vector<1x16x8xf32>,
    return
  }
  func.func @transform_0(%arg0: i32, %arg1: i32) -> (i32, i32, i32) {
    %c0_i32 = arith.constant 0 : i32
    %c0_i32_0 = arith.constant 0 : i32
    %c0_i32_1 = arith.constant 0 : i32
    return %arg0, %c0_i32, %c0_i32_0 : i32, i32, i32
  }
  func.func @transform_1(%arg0: i32, %arg1: i32) -> (i32, i32) {
    %c0_i32 = arith.constant 0 : i32
    %c0_i32_0 = arith.constant 0 : i32
    %c0_i32_1 = arith.constant 0 : i32
    return %c0_i32, %c0_i32_0 : i32, i32
  }
  func.func @transform_2(%arg0: i32, %arg1: i32) -> (i32, i32) {
    %c0_i32 = arith.constant 0 : i32
    %c0_i32_0 = arith.constant 0 : i32
    %c0_i32_1 = arith.constant 0 : i32
    return %c0_i32, %c0_i32_0 : i32, i32
  }
  func.func @transform_3(%arg0: i32, %arg1: i32) -> (i32, i32) {
    %c0_i32 = arith.constant 0 : i32
    %c0_i32_0 = arith.constant 0 : i32
    %c0_i32_1 = arith.constant 0 : i32
    return %c0_i32, %c0_i32_0 : i32, i32
  }
  func.func @transform_4(%arg0: i32, %arg1: i32) -> (i32, i32) {
    %c0_i32 = arith.constant 0 : i32
    %c0_i32_0 = arith.constant 0 : i32
    %c0_i32_1 = arith.constant 0 : i32
    return %c0_i32, %c0_i32_0 : i32, i32
  }
  func.func @transform_5(%arg0: i32, %arg1: i32) -> (i32, i32) {
    %c0_i32 = arith.constant 0 : i32
    %c0_i32_0 = arith.constant 0 : i32
    %c0_i32_1 = arith.constant 0 : i32
    return %c0_i32, %c0_i32_0 : i32, i32
  }
  func.func @transform_6(%arg0: i32, %arg1: i32) -> (i32, i32) {
    %c0_i32 = arith.constant 0 : i32
    %c0_i32_0 = arith.constant 0 : i32
    %c0_i32_1 = arith.constant 0 : i32
    return %c0_i32, %c0_i32_0 : i32, i32
  }
  func.func @transform_7(%arg0: i32, %arg1: i32) -> (i32, i32) {
    %c0_i32 = arith.constant 0 : i32
    %c0_i32_0 = arith.constant 0 : i32
    return %arg1, %c0_i32 : i32, i32
  }
  func.func @transform_8(%arg0: i32, %arg1: i32) -> (i32, i32) {
    %c0_i32 = arith.constant 0 : i32
    %c0_i32_0 = arith.constant 0 : i32
    return %arg1, %c0_i32 : i32, i32
  }
  func.func @transform_9(%arg0: i32, %arg1: i32) -> (i32, i32, i32) {
    %c0_i32 = arith.constant 0 : i32
    %c0_i32_0 = arith.constant 0 : i32
    return %arg0, %arg1, %c0_i32 : i32, i32, i32
  }
}

</mosaic_0001>

<bundles_post_ra>
// kernel: cnnae_forward.1
= control target key start
LH: loop header
LB: loop body
LE: loop exit
PB: predicated region body
PF: predicated region fallthrough
CT: control target
= control target key end

     0   :  { %14 = vsyncpa [#allocation4], 0  ;;  %s1640_s0 = inlined_call_operand.vmem [shape: bf16[2,8,128], index: 0, kind: input, shape index: {}]   ;;  %s1641_s1 = inlined_call_operand.vmem [shape: f32[1,128], index: 1, kind: input, shape index: {}]   ;;  %s1642_s2 = inlined_call_operand.vmem [shape: f32[1,128], index: 2, kind: input, shape index: {}]   ;;  %s1643_s3 = inlined_call_operand.vmem [shape: bf16[128,128], index: 3, kind: input, shape index: {}]   ;;  %s1644_s4 = inlined_call_operand.vmem [shape: bf16[128,128], index: 4, kind: input, shape index: {}]   ;;  %s1645_s5 = inlined_call_operand.hbm [shape: bf16[128,128], index: 5, kind: input, shape index: {}]   ;;  %s1646_s6 = inlined_call_operand.hbm [shape: f32[1,128], index: 6, kind: input, shape index: {}]   ;;  %s1647_s7 = inlined_call_operand.hbm [shape: bf16[16,128], index: 7, kind: input, shape index: {}]   ;;  %s1648_s8 = inlined_call_operand.vmem [shape: f32[16,1], index: 8, kind: input, shape index: {}]   ;;  %s1649_s9 = inlined_call_operand.vmem [shape: f32[2,16,8], index: 9, kind: output, shape index: {}]  }
   0x1   :  { %15 = vsyncpa [#allocation6], 0  ;;  %s1339_s30 = smov [#allocation5]   ;;  %s1340_s11 = smov [#allocation3]  }
   0x2   :  { %s44_s10 = sshll.u32 %s1339_s30, 4  ;;  %s31_s12 = sshll.u32 %s1340_s11, 4  ;;  %s45_s10 = int_to_ptr.vmem [resolvable:$true] %s44_s10  ;;  %s32_s12 = int_to_ptr.vmem [resolvable:$true] %s31_s12 }
   0x3   :  { %s1283_s13 = scalar_lea.vmem %s45_s10, 16  ;;  %s1287_s14 = scalar_lea.vmem %s45_s10, 32 }
   0x4   :  { %p1284_p0 = scmp.ne.s32.totalorder %s45_s10, %s1283_s13  ;;  %p1288_p1 = scmp.lt.s32.totalorder %s45_s10, %s45_s10 }
   0x5   :  { %p1289_p2 = scmp.lt.s32.totalorder %s1287_s14, %s1283_s13 }
   0x7   :  { %p1290_p3 = por %p1289_p2, %p1288_p1 }
   0x9   :  { %p1291_p4 = pnand %p1290_p3, %p1284_p0 }
   0xb   :  { %1294 = shalt.err (!%p1291_p4)
}
   0xc   :  { %47 = dma.hbm_to_vmem [thread:$0]  %s1646_s6, 16, %s45_s10, [#allocation6]  }
   0xd   :  { %s1303_s17 = scalar_lea.vmem %s32_s12, 1024  ;;  %p1308_p6 = scmp.lt.s32.totalorder %s32_s12, %s32_s12 }
   0xe   :  { %p1304_p5 = scmp.ne.s32.totalorder %s32_s12, %s1303_s17  ;;  %p1309_p7 = scmp.lt.s32.totalorder %s1303_s17, %s1303_s17 }
  0x10   :  { %p1310_p8 = por %p1309_p7, %p1308_p6 }
  0x12   :  { %p1311_p9 = pnand %p1310_p8, %p1304_p5 }
  0x14   :  { %1314 = shalt.err (!%p1311_p9)
}
  0x15   :  { %s1341_s18 = smov 64   ;;  %s1342_s19 = smov 4  }
  0x16   :  { %37 = dma.hbm_to_vmem [thread:$0]  %s1645_s5, 1024, %s32_s12, [#allocation4], %s1341_s18, %s1341_s18, %s1342_s19  }
  0x17   :  { %s1343_s22 = smov [#allocation7]  }
  0x18   :  { %s53_s23 = sshll.u32 %s1343_s22, 4  ;;  %s54_s23 = int_to_ptr.vmem [resolvable:$true] %s53_s23 }
  0x19   :  { %s1323_s24 = scalar_lea.vmem %s54_s23, 128  ;;  %p1328_p11 = scmp.lt.s32.totalorder %s54_s23, %s54_s23 }
  0x1a   :  { %p1324_p10 = scmp.ne.s32.totalorder %s54_s23, %s1323_s24  ;;  %p1329_p12 = scmp.lt.s32.totalorder %s1323_s24, %s1323_s24 }
  0x1c   :  { %p1330_p13 = por %p1329_p12, %p1328_p11 }
  0x1e   :  { %p1331_p0 = pnand %p1330_p13, %p1324_p10 }
  0x20   :  { %1334 = shalt.err (!%p1331_p0)
}
  0x21   :  { %59 = dma.hbm_to_vmem [thread:$0]  %s1647_s7, 128, %s54_s23, [#allocation6], %s1341_s18, %s1341_s18, %s1342_s19  }
  0x22   :  { %1335 = dma.done.wait [#allocation4], 1024  }
  0x23   :  { %1336 = vsyncadd [#allocation4], 4294966272 }
  0x24   :  { %1337 = dma.done.wait [#allocation6], 144  }
  0x25   :  { %1338 = vsyncadd [#allocation6], 4294967152  ;;  %v78_v0 = vld [vmem:[%s1640_s0] sm:$0xff]   ;;  %v1221_v3 = vld [vmem:[%s1644_s4 + $0x38] sm:$0xff]   ;;  %v1344_v6 = vmov 0.0   ;;  %vm1345_vm0 = vmmov 0   ;;  %v76_v31 = vlaneseq }
  0x26   :  { %v79_v1 = vunpack.c.l.bf16 %v78_v0  ;;  %v443_v2 = vunpack.c.h.bf16 %v78_v0  ;;  %v1222_v4 = vld [vmem:[%s1643_s3 + $0x38] sm:$0xff]   ;;  %v1223_v5 = vld [vmem:[%s1644_s4 + $0x30] sm:$0xff]   ;;  %1079 = vmatprep.subr.bf16.mxu0 %v1344_v6  ;;  %1099 = vmatprep.subr.bf16.mxu1 %v1344_v6  ;;  %v1225_v16 = vld [vmem:[%s1644_s4 + $0x28] sm:$0xff]   ;;  %vm865_vm5 = vcmask 64512  }
  0x27   :  { %1080 = vmatpush3.bf16.msra.mxu0 %v1221_v3  ;;  %1100 = vmatpush3.bf16.msra.mxu1 %v1222_v4  ;;  %v1224_v15 = vld [vmem:[%s1643_s3 + $0x30] sm:$0xff]   ;;  %v1226_v17 = vld [vmem:[%s1643_s3 + $0x28] sm:$0xff]   ;;  %v1227_v18 = vld [vmem:[%s1644_s4 + $0x20] sm:$0xff]   ;;  %v1486_v35 = vshrl.u32 %v76_v31, 7 }
  0x28   :  { %80 = vadd.xlane.f32.xlu0 %v79_v1  ;;  %1081 = vmatprep.subr.bf16.mxu0 %v1344_v6  ;;  %v1228_v19 = vld [vmem:[%s1643_s3 + $0x20] sm:$0xff]   ;;  %v1229_v20 = vld [vmem:[%s1644_s4 + $0x18] sm:$0xff]   ;;  %v1231_v22 = vld [vmem:[%s1644_s4 + $0x10] sm:$0xff]  }
  0x29   :  { %1101 = vmatprep.subr.bf16.mxu1 %v1344_v6  ;;  %v1230_v21 = vld [vmem:[%s1643_s3 + $0x18] sm:$0xff]   ;;  %v1232_v23 = vld [vmem:[%s1643_s3 + $0x10] sm:$0xff]   ;;  %v1233_v24 = vld [vmem:[%s1644_s4 + $0x8] sm:$0xff]   ;;  %1095 = vmatprep.mubr.msk.bf16.mxu0 %vm1345_vm0, %v1344_v6  ;;  %vm1019_vm1 = vcmp.ne.s32.totalorder %v1486_v35, 0  ;;  %vm1020_vm3 = vcmp.ne.s32.totalorder %v1486_v35, 7 }
  0x2a   :  { %v1234_v25 = vld [vmem:[%s1643_s3 + $0x8] sm:$0xff]   ;;  %v1235_v26 = vld [vmem:[%s1644_s4] sm:$0xff]   ;;  %1115 = vmatprep.mubr.msk.bf16.mxu1 %vm1345_vm0, %v1344_v6  ;;  %vm1500_vm2 = vmpackc.low %vm1019_vm1, %vm1019_vm1 }
  0x2b   :  { %1082 = vmatpush3.bf16.msra.mxu0 %v1223_v5  ;;  %1102 = vmatpush3.bf16.msra.mxu1 %v1224_v15  ;;  %v1236_v27 = vld [vmem:[%s1643_s3] sm:$0xff]   ;;  %v1238_v45 = vld [vmem:[%s1644_s4 + $0x38] sm:$0xff]   ;;  %v1240_v49 = vld [vmem:[%s1644_s4 + $0x30] sm:$0xff]  }
  0x2c   :  { %444 = vadd.xlane.f32.xlu0 %v443_v2  ;;  %1083 = vmatprep.subr.bf16.mxu0 %v1344_v6  ;;  %v940_v33 = vld [vmem:[%s1641_s1] ss:$0 sm:$0xff]  ;;  %v1239_v48 = vld [vmem:[#allocation3 + $0x30] sm:$0xff]   ;;  %v1241_v50 = vld [vmem:[#allocation3 + $0x28] sm:$0xff]  }
  0x2d   :  { %1103 = vmatprep.subr.bf16.mxu1 %v1344_v6  ;;  %v1491_v37 = vld [vmem:[%s1642_s2] ss:$0 sm:$0xff]  ;;  %v1242_v51 = vld [vmem:[%s1644_s4 + $0x28] sm:$0xff]   ;;  %v1246_v55 = vld [vmem:[%s1644_s4 + $0x18] sm:$0xff]  }
  0x2e   :  { %v1237_v41 = vld [vmem:[#allocation3 + $0x38] sm:$0xff]   ;;  %v1243_v52 = vld [vmem:[#allocation3 + $0x20] sm:$0xff]   ;;  %v1247_v57 = vld [vmem:[#allocation3 + $0x10] sm:$0xff]  }
  0x2f   :  { %1084 = vmatpush3.bf16.msra.mxu0 %v1225_v16  ;;  %1104 = vmatpush3.bf16.msra.mxu1 %v1226_v17  ;;  %v1244_v53 = vld [vmem:[%s1644_s4 + $0x20] sm:$0xff]   ;;  %v1248_v58 = vld [vmem:[%s1644_s4 + $0x10] sm:$0xff]   ;;  %v1250_v61 = vld [vmem:[%s1644_s4 + $0x8] sm:$0xff]  }
  0x30   :  { %1085 = vmatprep.subr.bf16.mxu0 %v1344_v6  ;;  %1105 = vmatprep.subr.bf16.mxu1 %v1344_v6  ;;  %v1245_v54 = vld [vmem:[#allocation3 + $0x18] sm:$0xff]   ;;  %v1249_v60 = vld [vmem:[#allocation3 + $0x8] sm:$0xff]   ;;  %v1251_v63 = vld [vmem:[#allocation3] sm:$0xff]  }
  0x31   :  { %vm1554_vm4 = vmpackc.low %vm1020_vm3, %vm1020_vm3  ;;  %v1253_v4 = vld [vmem:[%s1643_s3 + $0x38] sm:$0xff]   ;;  %v1262_v16 = vld [vmem:[#allocation3 + $0x18] sm:$0xff]  }
  0x32   :  { %v1261_v15 = vld [vmem:[%s1643_s3 + $0x18] sm:$0xff]   ;;  %v1263_v17 = vld [vmem:[%s1643_s3 + $0x10] sm:$0xff]  }
  0x33   :  { %1086 = vmatpush3.bf16.msra.mxu0 %v1227_v18  ;;  %1106 = vmatpush3.bf16.msra.mxu1 %v1228_v19  ;;  %v1264_v18 = vld [vmem:[#allocation3 + $0x10] sm:$0xff]   ;;  %v1265_v19 = vld [vmem:[%s1643_s3 + $0x8] sm:$0xff]  }
  0x34   :  { %1087 = vmatprep.subr.bf16.mxu0 %v1344_v6  ;;  %1107 = vmatprep.subr.bf16.mxu1 %v1344_v6  ;;  %v1270_v3 = vld [vmem:[#allocation7] sm:$0xff]  }
  0x37   :  { %1088 = vmatpush3.bf16.msra.mxu0 %v1229_v20  ;;  %1108 = vmatpush3.bf16.msra.mxu1 %v1230_v21  ;;  %v1266_v20 = vld [vmem:[#allocation3 + $0x8] sm:$0xff]   ;;  %v1267_v21 = vld [vmem:[%s1643_s3] sm:$0xff]  }
  0x38   :  { %1089 = vmatprep.subr.bf16.mxu0 %v1344_v6  ;;  %1109 = vmatprep.subr.bf16.mxu1 %v1344_v6 }
  0x3b   :  { %1090 = vmatpush3.bf16.msra.mxu0 %v1231_v22  ;;  %1110 = vmatpush3.bf16.msra.mxu1 %v1232_v23  ;;  %v1268_v23 = vld [vmem:[#allocation3] sm:$0xff]  }
  0x3c   :  { %1091 = vmatprep.subr.bf16.mxu0 %v1344_v6  ;;  %1111 = vmatprep.subr.bf16.mxu1 %v1344_v6 }
  0x3f   :  { %1092 = vmatpush3.bf16.msra.mxu0 %v1233_v24  ;;  %1112 = vmatpush3.bf16.msra.mxu1 %v1234_v25 }
  0x40   :  { %1093 = vmatprep.subr.bf16.mxu0 %v1344_v6  ;;  %1113 = vmatprep.subr.bf16.mxu1 %v1344_v6 }
  0x43   :  { %1094 = vmatpush3.bf16.msra.mxu0 %v1235_v26  ;;  %1114 = vmatpush3.bf16.msra.mxu1 %v1236_v27  ;;  %v807_v27 = vld [vmem:[%s1648_s8 + $0x8] sm:$0xff] }
  0x44   :  { %1119 = vmatprep.subr.bf16.mxu0 %v1344_v6  ;;  %1139 = vmatprep.subr.bf16.mxu1 %v1344_v6 }
  0xb1   :  { %v81_v7 = vpop.xlane.xlu0 %80 }
  0xb2   :  { %v83_v8 = vmul.f32 0.0078125, %v81_v7  ;;  %v1254_v7 = vld [vmem:[#allocation3 + $0x38] sm:$0xff]  }
  0xb4   :  { %v84_v9 = vsub.f32 %v79_v1, %v83_v8  ;;  %v1252_v1 = vld [vmem:[%s1644_s4] sm:$0xff]  }
  0xb5   :  { %v445_v10 = vpop.xlane.xlu0 %444 }
  0xb6   :  { %v446_v11 = vmul.f32 0.0078125, %v445_v10  ;;  %v85_v12 = vmul.f32 %v84_v9, %v84_v9  ;;  %v1256_v10 = vld [vmem:[#allocation3 + $0x30] sm:$0xff]  }
  0xb8   :  { %v1423_v13 = vsub.f32 %v443_v2, %v446_v11  ;;  %86 = vadd.xlane.f32.xlu1 %v85_v12  ;;  %v1257_v11 = vld [vmem:[%s1643_s3 + $0x28] sm:$0xff]   ;;  %v1258_v12 = vld [vmem:[#allocation3 + $0x28] sm:$0xff]  }
  0xba   :  { %v448_v14 = vmul.f32 %v1423_v13, %v1423_v13 }
  0xbc   :  { %449 = vadd.xlane.f32.xlu1 %v448_v14  ;;  %v1260_v14 = vld [vmem:[#allocation3 + $0x20] sm:$0xff]  }
 0x141   :  { %v87_v28 = vpop.xlane.xlu1 %86 }
 0x142   :  { %v88_v29 = vmul.f32 0.0078125, %v87_v28  ;;  %v1346_v28 = vmov 0  }
 0x143   :  { %1220 = vset.pattern.permute.xlu1 %v1346_v28  ;;  %1219 = vset.pattern.permute.xlu0 %v1346_v28 }
 0x144   :  { %v89_v30 = vadd.f32 1e-05, %v88_v29  ;;  %v872_v29 = vld [vmem:[%s1648_s8] sm:$0xff]  ;;  %815 = vperm.xlu1 %1220, %v807_v27  }
 0x145   :  { %v450_v36 = vpop.xlane.xlu1 %449  ;;  %810 = vperm.xlu0 %1219, %v872_v29  }
 0x146   :  { %1271 = vrsqrt.f32 %v89_v30  ;;  %v451_v39 = vmul.f32 0.0078125, %v450_v36 }
 0x148   :  { %v452_v46 = vadd.f32 1e-05, %v451_v39  ;;  %876 = vperm.xlu1 %1220, %v872_v29   ;;  %v976_v39 = vld [vmem:[#allocation5] ss:$0 sm:$0xff] }
 0x14a   :  { %1273 = vrsqrt.f32 %v452_v46 }
 0x14c   :  { %881 = vperm.xlu1 %1220, %v807_v27  }
 0x153   :  { %v1272_v32 = vpop.eup %1271 }
 0x154   :  { %v91_v34 = vmul.f32 %v1272_v32, %v84_v9  ;;  %v1255_v9 = vld [vmem:[%s1643_s3 + $0x30] sm:$0xff]  }
 0x156   :  { %v99_v38 = vmul.f32 %v940_v33, %v91_v34 }
 0x157   :  { %v1274_v56 = vpop.eup %1273 }
 0x158   :  { %v1494_v40 = vadd.f32 %v1491_v37, %v99_v38  ;;  %v454_v59 = vmul.f32 %v1274_v56, %v1423_v13  ;;  %v1259_v13 = vld [vmem:[%s1643_s3 + $0x20] sm:$0xff]  }
 0x15a   :  { %v131_v42 = vpack.c.bf16 %v1494_v40, %v1494_v40  ;;  %v109_v43 = vrot.slane %v1494_v40, 7  ;;  %v462_v62 = vmul.f32 %v940_v33, %v454_v59  ;;  %v112_v0 = vrot.slane %v1494_v40, 1 }
 0x15c   :  { %1096 = vmatmul.mubr.bf16.vlgmr.msra.gmra.mxu0 %v131_v42  ;;  %v961_v47 = vpack.c.bf16 %v109_v43, %v109_v43  ;;  %v1552_v2 = vadd.f32 %v1491_v37, %v462_v62  ;;  %v974_v5 = vpack.c.bf16 %v112_v0, %v112_v0 }
 0x15d   :  { %1120 = vmatpush3.bf16.msra.mxu0 %v1237_v41  ;;  %1135 = vmatprep.mubr.msk.bf16.mxu0 %vm1345_vm0, %v1344_v6 }
 0x15e   :  { %1116 = vmatmul.mubr.msk.bf16.vlgmr.msra.gmra.mxu1 %vm1500_vm2, %v961_v47  ;;  %1121 = vmatprep.subr.bf16.mxu0 %v1344_v6  ;;  %v492_v8 = vpack.c.bf16 %v1552_v2, %v1552_v2  ;;  %v471_v22 = vrot.slane %v1552_v2, 7  ;;  %v473_v24 = vrot.slane %v1552_v2, 1 }
 0x15f   :  { %1140 = vmatpush3.bf16.msra.mxu1 %v1238_v45  ;;  %1155 = vmatprep.mubr.msk.bf16.mxu1 %vm1345_vm0, %v1344_v6 }
 0x160   :  { %1141 = vmatprep.subr.bf16.mxu1 %v1344_v6  ;;  %v999_v25 = vpack.c.bf16 %v471_v22, %v471_v22  ;;  %v1012_v26 = vpack.c.bf16 %v473_v24, %v473_v24 }
 0x161   :  { %1122 = vmatpush3.bf16.msra.mxu0 %v1239_v48 }
 0x162   :  { %1123 = vmatprep.subr.bf16.mxu0 %v1344_v6 }
 0x163   :  { %1142 = vmatpush3.bf16.msra.mxu1 %v1240_v49 }
 0x164   :  { %1143 = vmatprep.subr.bf16.mxu1 %v1344_v6 }
 0x165   :  { %1124 = vmatpush3.bf16.msra.mxu0 %v1241_v50 }
 0x166   :  { %1125 = vmatprep.subr.bf16.mxu0 %v1344_v6 }
 0x167   :  { %1144 = vmatpush3.bf16.msra.mxu1 %v1242_v51 }
 0x168   :  { %1145 = vmatprep.subr.bf16.mxu1 %v1344_v6 }
 0x169   :  { %1126 = vmatpush3.bf16.msra.mxu0 %v1243_v52  ;;  %v1269_v52 = vld [vmem:[#allocation7] sm:$0xff]  }
 0x16a   :  { %1127 = vmatprep.subr.bf16.mxu0 %v1344_v6 }
 0x16b   :  { %1146 = vmatpush3.bf16.msra.mxu1 %v1244_v53 }
 0x16c   :  { %1147 = vmatprep.subr.bf16.mxu1 %v1344_v6 }
 0x16d   :  { %1128 = vmatpush3.bf16.msra.mxu0 %v1245_v54 }
 0x16e   :  { %1129 = vmatprep.subr.bf16.mxu0 %v1344_v6 }
 0x16f   :  { %1148 = vmatpush3.bf16.msra.mxu1 %v1246_v55 }
 0x170   :  { %1149 = vmatprep.subr.bf16.mxu1 %v1344_v6 }
 0x171   :  { %1130 = vmatpush3.bf16.msra.mxu0 %v1247_v57 }
 0x172   :  { %1131 = vmatprep.subr.bf16.mxu0 %v1344_v6 }
 0x173   :  { %1150 = vmatpush3.bf16.msra.mxu1 %v1248_v58 }
 0x174   :  { %1151 = vmatprep.subr.bf16.mxu1 %v1344_v6 }
 0x175   :  { %1132 = vmatpush3.bf16.msra.mxu0 %v1249_v60 }
 0x176   :  { %1133 = vmatprep.subr.bf16.mxu0 %v1344_v6 }
 0x177   :  { %1152 = vmatpush3.bf16.msra.mxu1 %v1250_v61 }
 0x178   :  { %1153 = vmatprep.subr.bf16.mxu1 %v1344_v6 }
 0x179   :  { %1134 = vmatpush3.bf16.msra.mxu0 %v1251_v63 }
 0x17a   :  { %1159 = vmatprep.subr.bf16.mxu0 %v1344_v6 }
 0x17b   :  { %1154 = vmatpush3.bf16.msra.mxu1 %v1252_v1 }
 0x17c   :  { %1136 = vmatmul.mubr.msk.bf16.vlgmr.msra.gmra.mxu0 %vm1554_vm4, %v974_v5  ;;  %1179 = vmatprep.subr.bf16.mxu1 %v1344_v6 }
 0x17d   :  { %1160 = vmatpush3.bf16.msra.mxu0 %v1253_v4  ;;  %1175 = vmatprep.mubr.msk.bf16.mxu0 %vm1345_vm0, %v1344_v6 }
 0x17e   :  { %1156 = vmatmul.mubr.bf16.vlgmr.msra.gmra.mxu1 %v492_v8  ;;  %1161 = vmatprep.subr.bf16.mxu0 %v1344_v6 }
 0x17f   :  { %1180 = vmatpush3.bf16.msra.mxu1 %v1254_v7  ;;  %1195 = vmatprep.mubr.msk.bf16.mxu1 %vm1345_vm0, %v1344_v6 }
 0x180   :  { %1181 = vmatprep.subr.bf16.mxu1 %v1344_v6 }
 0x181   :  { %1162 = vmatpush3.bf16.msra.mxu0 %v1255_v9 }
 0x182   :  { %1163 = vmatprep.subr.bf16.mxu0 %v1344_v6 }
 0x183   :  { %1182 = vmatpush3.bf16.msra.mxu1 %v1256_v10 }
 0x184   :  { %1183 = vmatprep.subr.bf16.mxu1 %v1344_v6 }
 0x185   :  { %1164 = vmatpush3.bf16.msra.mxu0 %v1257_v11 }
 0x186   :  { %1165 = vmatprep.subr.bf16.mxu0 %v1344_v6 }
 0x187   :  { %1184 = vmatpush3.bf16.msra.mxu1 %v1258_v12 }
 0x188   :  { %1185 = vmatprep.subr.bf16.mxu1 %v1344_v6 }
 0x189   :  { %1166 = vmatpush3.bf16.msra.mxu0 %v1259_v13 }
 0x18a   :  { %1167 = vmatprep.subr.bf16.mxu0 %v1344_v6 }
 0x18b   :  { %1186 = vmatpush3.bf16.msra.mxu1 %v1260_v14 }
 0x18c   :  { %1187 = vmatprep.subr.bf16.mxu1 %v1344_v6 }
 0x18d   :  { %1168 = vmatpush3.bf16.msra.mxu0 %v1261_v15 }
 0x18e   :  { %1169 = vmatprep.subr.bf16.mxu0 %v1344_v6 }
 0x18f   :  { %1188 = vmatpush3.bf16.msra.mxu1 %v1262_v16 }
 0x190   :  { %1189 = vmatprep.subr.bf16.mxu1 %v1344_v6 }
 0x191   :  { %1170 = vmatpush3.bf16.msra.mxu0 %v1263_v17 }
 0x192   :  { %1171 = vmatprep.subr.bf16.mxu0 %v1344_v6 }
 0x193   :  { %1190 = vmatpush3.bf16.msra.mxu1 %v1264_v18 }
 0x194   :  { %1191 = vmatprep.subr.bf16.mxu1 %v1344_v6 }
 0x195   :  { %1172 = vmatpush3.bf16.msra.mxu0 %v1265_v19 }
 0x196   :  { %1173 = vmatprep.subr.bf16.mxu0 %v1344_v6 }
 0x197   :  { %1192 = vmatpush3.bf16.msra.mxu1 %v1266_v20 }
 0x198   :  { %1193 = vmatprep.subr.bf16.mxu1 %v1344_v6 }
 0x199   :  { %1174 = vmatpush3.bf16.msra.mxu0 %v1267_v21 }
 0x19a   :  { %1199 = vmatprep.subr.bf16.mxu0 %v1344_v6 }
 0x19b   :  { %1194 = vmatpush3.bf16.msra.mxu1 %v1268_v23 }
 0x19c   :  { %1176 = vmatmul.mubr.msk.bf16.vlgmr.msra.gmra.mxu0 %vm1500_vm2, %v999_v25  ;;  %1205 = vmatprep.subr.bf16.mxu1 %v1344_v6 }
 0x19d   :  { %1201 = vmatprep.mubr.msk.bf16.mxu0 %vm1345_vm0, %v1344_v6 }
 0x19e   :  { %1196 = vmatmul.mubr.msk.bf16.vlgmr.msra.gmra.mxu1 %vm1554_vm4, %v1012_v26 }
 0x19f   :  { %1207 = vmatprep.mubr.msk.bf16.mxu1 %vm1345_vm0, %v1344_v6 }
 0x1bf   :  { %v816_v9 = vpop.permute.xlu1 %815 }
 0x1c0   :  { %v811_v4 = vpop.permute.xlu0 %810 }
 0x1c3   :  { %v877_v13 = vpop.permute.xlu1 %876 }
 0x1c7   :  { %v882_v17 = vpop.permute.xlu1 %881 }
 0x21c   :  { %v230_v30 = vpop.f32.mrf.mxu0 }
 0x21e   :  { %v1097_v31 = vpop.f32.mrf.mxu0  ;;  %v318_v32 = vpop.f32.mrf.mxu1 }
 0x21f   :  { %v319_v37 = vadd.f32 %v318_v32, %v230_v30 }
 0x220   :  { %v233_v33 = vpop.f32.mrf.mxu0  ;;  %v1117_v6 = vpop.f32.mrf.mxu1 }
 0x222   :  { %v1098_v34 = vpop.f32.mrf.mxu0  ;;  %v321_v35 = vpop.f32.mrf.mxu1 }
 0x224   :  { %v1118_v36 = vpop.f32.mrf.mxu1 }
 0x23c   :  { %v423_v38 = vpop.f32.mrf.mxu0 }
 0x23d   :  { %v429_v40 = vadd.f32 %v423_v38, %v319_v37 }
 0x23e   :  { %v1137_v41 = vpop.f32.mrf.mxu0  ;;  %v591_v42 = vpop.f32.mrf.mxu1 }
 0x23f   :  { %v437_v43 = vadd.f32 %v976_v39, %v429_v40 }
 0x240   :  { %v426_v44 = vpop.f32.mrf.mxu0  ;;  %v1157_v45 = vpop.f32.mrf.mxu1 }
 0x241   :  { %v438_v46 = vmax.f32 %v437_v43, 0.0 }
 0x242   :  { %v1138_v47 = vpop.f32.mrf.mxu0  ;;  %v594_v48 = vpop.f32.mrf.mxu1 }
 0x243   :  { %v439_v49 = vpack.c.bf16 %v438_v46, %v438_v46 }
 0x244   :  { %v1158_v50 = vpop.f32.mrf.mxu1 }
 0x245   :  { %440 = vst [vmem:[#allocation2] sm:$0xf] %v439_v49 }
 0x24c   :  { %v805_v51 = vld [vmem:[#allocation2] sm:$0xf] }
 0x24d   :  { %1200 = vmatpush3.bf16.xpose.msra.mxu0 %v805_v51 }
 0x254   :  { %1202 = vmatmul.mubr.bf16.vlgmr.msra.gmra.mxu0 %v1269_v52 }
 0x25c   :  { %v679_v53 = vpop.f32.mrf.mxu0 }
 0x25d   :  { %v680_v54 = vadd.f32 %v679_v53, %v591_v42 }
 0x25e   :  { %v1177_v55 = vpop.f32.mrf.mxu0  ;;  %v784_v56 = vpop.f32.mrf.mxu1 }
 0x25f   :  { %v790_v57 = vadd.f32 %v784_v56, %v680_v54 }
 0x260   :  { %v682_v58 = vpop.f32.mrf.mxu0  ;;  %v1197_v59 = vpop.f32.mrf.mxu1 }
 0x261   :  { %v798_v60 = vadd.f32 %v976_v39, %v790_v57 }
 0x262   :  { %v1178_v61 = vpop.f32.mrf.mxu0  ;;  %v787_v62 = vpop.f32.mrf.mxu1 }
 0x263   :  { %v799_v63 = vmax.f32 %v798_v60, 0.0 }
 0x264   :  { %v1198_v0 = vpop.f32.mrf.mxu1 }
 0x265   :  { %v800_v1 = vpack.c.bf16 %v799_v63, %v799_v63 }
 0x267   :  { %802 = vst [vmem:[#allocation2 + $0x4] sm:$0xf] %v800_v1 }
 0x26e   :  { %v871_v2 = vld [vmem:[#allocation2 + $0x4] sm:$0xf] }
 0x26f   :  { %1206 = vmatpush3.bf16.xpose.msra.mxu1 %v871_v2 }
 0x276   :  { %1208 = vmatmul.mubr.bf16.vlgmr.msra.gmra.mxu1 %v1270_v3 }
 0x314   :  { %v858_v5 = vpop.f32.mrf.mxu0 }
 0x315   :  { %v859_v7 = vadd.f32 %v858_v5, %v811_v4 }
 0x316   :  { %v1203_v8 = vpop.f32.mrf.mxu0 }
 0x317   :  { %866 = vst.msk [vmem:[%s1649_s9] sm:$0xff] %vm865_vm5, %v859_v7 }
 0x318   :  { %v861_v10 = vpop.f32.mrf.mxu0 }
 0x319   :  { %v862_v11 = vadd.f32 %v861_v10, %v816_v9 }
 0x31a   :  { %v1204_v12 = vpop.f32.mrf.mxu0 }
 0x31b   :  { %867 = vst.msk [vmem:[%s1649_s9 + $0x8] sm:$0xff] %vm865_vm5, %v862_v11 }
 0x336   :  { %v924_v14 = vpop.f32.mrf.mxu1 }
 0x337   :  { %v925_v15 = vadd.f32 %v924_v14, %v877_v13 }
 0x338   :  { %v1209_v16 = vpop.f32.mrf.mxu1 }
 0x339   :  { %1017 = vst.msk [vmem:[%s1649_s9 + $0x10] sm:$0xff] %vm865_vm5, %v925_v15 }
 0x33a   :  { %v927_v18 = vpop.f32.mrf.mxu1 }
 0x33b   :  { %v928_v19 = vadd.f32 %v927_v18, %v882_v17 }
 0x33c   :  { %v1210_v20 = vpop.f32.mrf.mxu1 }
 0x33d   :  { %1018 = vst.msk [vmem:[%s1649_s9 + $0x18] sm:$0xff] %vm865_vm5, %v928_v19 }
 0x33e   :  { %938 = vsyncpa [#allocation4], 1 }
 0x33f   :  { %939 = vsyncpa [#allocation6], 1 }

</bundles_post_ra>
